<compile_context>
chip_gen: v6e
topology: v6e:2x2x1
jax: 0.10.0
libtpu: 0.0.40
codegen_flags: <defaults>
</compile_context>

<pallas_src>
import jax
import jax.numpy as jnp
from jax.experimental import pallas as pl
from jax.experimental.pallas import tpu as pltpu


def discriminate_kernel(x_ref, w1_ref, b1_ref, w2_ref, b2_ref, w3_ref, b3_ref,
                        o_ref):
    # x_ref: (TB, S) caller dtype; w1: (S, 256) / w2: (256, 128) compute dtype;
    # b1/b2: (1, out) f32; w3 row: (1, 128) f32; b3: (1, 1) f32 in SMEM;
    # o_ref: (1, TB) f32.
    #
    # Cast x on the VPU here (free slot) instead of in the wrapper: avoids an
    # extra full HBM pass over x before the kernel even starts.
    x = x_ref[...].astype(w1_ref.dtype)

    h1 = jnp.dot(x, w1_ref[...], preferred_element_type=jnp.float32)
    h1 = jnp.maximum(h1 + b1_ref[...], 0.0)       # ReLU; eval dropout = identity

    h2 = jnp.dot(h1.astype(w2_ref.dtype), w2_ref[...],
                 preferred_element_type=jnp.float32)
    h2 = jnp.maximum(h2 + b2_ref[...], 0.0)       # ReLU; eval dropout = identity

    # Linear(128, 1): contract the feature axis of h2 against the single output
    # row (trans-B contraction) so the result comes out lane-dense as (1, TB)
    # instead of a 1-lane-wide (TB, 1) column -> unmasked full-lane stores.
    logits = jax.lax.dot_general(
        w3_ref[...], h2, (((1,), (1,)), ((), ())),
        preferred_element_type=jnp.float32)        # (1, TB)
    logits = logits + b3_ref[0, 0]
    o_ref[...] = jax.nn.sigmoid(logits)


def _choose_tile_b(B, max_tile=1024):
    """Pick the batch tile.

    * B <= 512: one full-extent block (block dims == array dims are always
      layout-legal), so small batches are neither padded nor split.
    * Larger B: tiles are multiples of 128 (keeps the partial last block
      (8, 128)-legal), capped at max_tile, targeting >= ~4 grid steps so the
      "parallel" batch axis can be sharded across v7x's two TensorCores.
    """
    if B <= 512:
        return B
    return min(max_tile, max(128, (pl.cdiv(B, 4) // 128) * 128))


def discriminate(x, w1, b1, w2, b2, w3, b3, *, max_tile_b=1024,
                 compute_dtype=jnp.bfloat16):
    """Forward pass.  Weights are [in, out]; biases are [1, out]."""
    B, S = x.shape
    H1 = w1.shape[1]       # 256
    H2 = w2.shape[1]       # 128

    tile_b = _choose_tile_b(B, max_tile_b)
    grid = (pl.cdiv(B, tile_b),)   # partial last block handled by Pallas masking

    # bf16 MXU operands for the resident weights (f32 accumulation); biases and
    # the final layer stay f32.  x is NOT cast here (see kernel).
    w1_c = w1.astype(compute_dtype)
    w2_c = w2.astype(compute_dtype)
    b1_f = b1.reshape(1, H1).astype(jnp.float32)
    b2_f = b2.reshape(1, H2).astype(jnp.float32)
    w3_row = w3.reshape(1, H2).astype(jnp.float32)
    b3_s = b3.reshape(1, 1).astype(jnp.float32)

    isz = lambda a: jnp.dtype(a.dtype).itemsize
    cost = pl.CostEstimate(
        flops=int(2 * B * (S * H1 + H1 * H2 + H2)),
        transcendentals=int(B),                                  # sigmoid
        bytes_accessed=int(x.size * isz(x)
                           + w1_c.size * isz(w1_c) + w2_c.size * isz(w2_c)
                           + (H1 + H2 + H2 + 1) * 4              # biases + w3
                           + B * 4),                             # output
    )

    # TODO(synk): for very large seq_len (tens of thousands) guard v7x's 64 MiB
    # VMEM: single-buffer the invariant W1 block (pipeline_mode=pl.Buffered(1))
    # or split the layer-1 contraction over a K grid axis with an f32
    # accumulator scratch.  Irrelevant at small/medium S.
    out_row = pl.pallas_call(
        discriminate_kernel,
        out_shape=jax.ShapeDtypeStruct((1, B), jnp.float32),
        grid_spec=pltpu.PrefetchScalarGridSpec(
            num_scalar_prefetch=0,
            grid=grid,
            in_specs=[
                pl.BlockSpec((tile_b, S), lambda i: (i, 0)),   # x tile
                pl.BlockSpec((S, H1),     lambda i: (0, 0)),   # W1^T (resident)
                pl.BlockSpec((1, H1),     lambda i: (0, 0)),   # b1
                pl.BlockSpec((H1, H2),    lambda i: (0, 0)),   # W2^T (resident)
                pl.BlockSpec((1, H2),     lambda i: (0, 0)),   # b2
                pl.BlockSpec((1, H2),     lambda i: (0, 0)),   # W3^T as a row
                pl.BlockSpec(memory_space=pltpu.MemorySpace.SMEM),  # b3 scalar
            ],
            out_specs=pl.BlockSpec((1, tile_b), lambda i: (0, i)),
        ),
        compiler_params=pltpu.CompilerParams(
            dimension_semantics=("parallel",)),
        cost_estimate=cost,
    )(x, w1_c, b1_f, w2_c, b2_f, w3_row, b3_s)

    return out_row.reshape(B, 1)


def init_params(key, seq_len):
    """Deterministic init mimicking nn.Linear (U(-1/sqrt(fan_in), 1/sqrt(fan_in)))."""
    def linear(k, fan_in, fan_out):
        kw, kb = jax.random.split(k)
        lim = 1.0 / jnp.sqrt(fan_in)
        # Store pre-transposed: [in, out]  (PyTorch weight is [out, in]).
        w = jax.random.uniform(kw, (fan_in, fan_out), jnp.float32, -lim, lim)
        b = jax.random.uniform(kb, (1, fan_out), jnp.float32, -lim, lim)
        return w, b

    k1, k2, k3 = jax.random.split(key, 3)
    w1, b1 = linear(k1, seq_len, 256)
    w2, b2 = linear(k2, 256, 128)
    w3, b3 = linear(k3, 128, 1)
    return w1, b1, w2, b2, w3, b3


def reference(x, w1, b1, w2, b2, w3, b3, compute_dtype=jnp.float32):
    cd = compute_dtype
    h1 = jnp.maximum(
        jnp.dot(x.astype(cd), w1.astype(cd),
                preferred_element_type=jnp.float32) + b1, 0.0)
    h2 = jnp.maximum(
        jnp.dot(h1.astype(cd), w2.astype(cd),
                preferred_element_type=jnp.float32) + b2, 0.0)
    return jax.nn.sigmoid(
        jnp.dot(h2, w3, preferred_element_type=jnp.float32) + b3)


if __name__ == "__main__":
    B, SEQ_LEN = 16, 64
    key = jax.random.PRNGKey(0)
    kx, kp = jax.random.split(key)

    x = jax.random.normal(kx, (B, SEQ_LEN), jnp.float32)
    params = init_params(kp, SEQ_LEN)

    out = jax.block_until_ready(discriminate(x, *params))
    assert out.shape == (B, 1), out.shape

    # Apples-to-apples reference (same bf16-operand / f32-accumulate matmuls).
    ref_match = reference(x, *params, compute_dtype=jnp.bfloat16)
    err_match = jnp.max(jnp.abs(out - ref_match))
    assert jnp.allclose(out, ref_match, atol=2e-3), f"max abs err {err_match}"

    # Sanity vs. the pure-f32 PyTorch-equivalent forward (bf16 rounding only).
    ref_f32 = reference(x, *params, compute_dtype=jnp.float32)
    err_f32 = jnp.max(jnp.abs(out - ref_f32))
    assert jnp.allclose(out, ref_f32, atol=3e-2), f"max abs err {err_f32}"

    print("KERNEL_OK")
</pallas_src>

<mosaic_0001>
module attributes {stable_mosaic.version = 11 : i64} {
  func.func @discriminate_kernel(%arg0: i32, %arg1: memref<16x64xf32, #tpu.memory_space<vmem>>, %arg2: memref<64x256xbf16, #tpu.memory_space<vmem>>, %arg3: memref<1x256xf32, #tpu.memory_space<vmem>>, %arg4: memref<256x128xbf16, #tpu.memory_space<vmem>>, %arg5: memref<1x128xf32, #tpu.memory_space<vmem>>, %arg6: memref<1x128xf32, #tpu.memory_space<vmem>>, %arg7: memref<1x1xf32, #tpu.memory_space<smem>>, %arg8: memref<1x16xf32, #tpu.memory_space<vmem>>) attributes {dimension_semantics = [#tpu.dimension_semantics<parallel>], iteration_bounds = array<i64: 1>, scalar_prefetch = 0 : i64, scratch_operands = 0 : i64, tpu.core_type = #tpu.core_type<tc>, window_params = [{transform_indices = @transform_0, window_bounds = array<i64: 16, 64>}, {pipeline_mode = #tpu.pipeline_mode<synchronous>, transform_indices = @transform_1, window_bounds = array<i64: 64, 256>}, {pipeline_mode = #tpu.pipeline_mode<synchronous>, transform_indices = @transform_2, window_bounds = array<i64: 1, 256>}, {pipeline_mode = #tpu.pipeline_mode<synchronous>, transform_indices = @transform_3, window_bounds = array<i64: 256, 128>}, {pipeline_mode = #tpu.pipeline_mode<synchronous>, transform_indices = @transform_4, window_bounds = array<i64: 1, 128>}, {pipeline_mode = #tpu.pipeline_mode<synchronous>, transform_indices = @transform_5, window_bounds = array<i64: 1, 128>}, {transform_indices = @transform_6, window_bounds = array<i64: 1, 1>}, {transform_indices = @transform_7, window_bounds = array<i64: 1, 16>}]} {
    %c0 = arith.constant 0 : index
    %c0_0 = arith.constant 0 : index
    %0 = vector.load %arg1[%c0, %c0_0] : memref<16x64xf32, #tpu.memory_space<vmem>>, vector<16x64xf32>
    %1 = arith.truncf %0 : vector<16x64xf32> to vector<16x64xbf16>
    %c0_1 = arith.constant 0 : index
    %c0_2 = arith.constant 0 : index
    %2 = vector.load %arg2[%c0_1, %c0_2] : memref<64x256xbf16, #tpu.memory_space<vmem>>, vector<64x256xbf16>
    %cst = arith.constant dense<0.000000e+00> : vector<16x256xf32>
    %3 = tpu.matmul %1, %2, %cst {dimension_numbers = #tpu.dot_dimension_numbers<[1], [0], [0], [1], [0, 0, 1, 1], [], []>} : vector<16x64xbf16>, vector<64x256xbf16>, vector<16x256xf32> -> vector<16x256xf32>
    %c0_3 = arith.constant 0 : index
    %c0_4 = arith.constant 0 : index
    %4 = vector.load %arg3[%c0_3, %c0_4] : memref<1x256xf32, #tpu.memory_space<vmem>>, vector<1x256xf32>
    %5 = vector.broadcast %4 : vector<1x256xf32> to vector<16x256xf32>
    %6 = arith.addf %3, %5 : vector<16x256xf32>
    %cst_5 = arith.constant 0.000000e+00 : f32
    %7 = vector.broadcast %cst_5 : f32 to vector<16x256xf32>
    %8 = arith.maximumf %6, %7 : vector<16x256xf32>
    %9 = arith.truncf %8 : vector<16x256xf32> to vector<16x256xbf16>
    %c0_6 = arith.constant 0 : index
    %c0_7 = arith.constant 0 : index
    %10 = vector.load %arg4[%c0_6, %c0_7] : memref<256x128xbf16, #tpu.memory_space<vmem>>, vector<256x128xbf16>
    %cst_8 = arith.constant dense<0.000000e+00> : vector<16x128xf32>
    %11 = tpu.matmul %9, %10, %cst_8 {dimension_numbers = #tpu.dot_dimension_numbers<[1], [0], [0], [1], [0, 0, 1, 1], [], []>} : vector<16x256xbf16>, vector<256x128xbf16>, vector<16x128xf32> -> vector<16x128xf32>
    %c0_9 = arith.constant 0 : index
    %c0_10 = arith.constant 0 : index
    %12 = vector.load %arg5[%c0_9, %c0_10] : memref<1x128xf32, #tpu.memory_space<vmem>>, vector<1x128xf32>
    %13 = vector.broadcast %12 : vector<1x128xf32> to vector<16x128xf32>
    %14 = arith.addf %11, %13 : vector<16x128xf32>
    %cst_11 = arith.constant 0.000000e+00 : f32
    %15 = vector.broadcast %cst_11 : f32 to vector<16x128xf32>
    %16 = arith.maximumf %14, %15 : vector<16x128xf32>
    %c0_12 = arith.constant 0 : index
    %c0_13 = arith.constant 0 : index
    %17 = vector.load %arg6[%c0_12, %c0_13] : memref<1x128xf32, #tpu.memory_space<vmem>>, vector<1x128xf32>
    %cst_14 = arith.constant dense<0.000000e+00> : vector<1x16xf32>
    %18 = tpu.matmul %17, %16, %cst_14 {dimension_numbers = #tpu.dot_dimension_numbers<[1], [1], [0], [0], [0, 0, 1, 0], [], []>} : vector<1x128xf32>, vector<16x128xf32>, vector<1x16xf32> -> vector<1x16xf32>
    %c0_15 = arith.constant 0 : index
    %c0_16 = arith.constant 0 : index
    %19 = memref.load %arg7[%c0_15, %c0_16] : memref<1x1xf32, #tpu.memory_space<smem>>
    %20 = vector.broadcast %19 : f32 to vector<1x16xf32>
    %21 = arith.addf %18, %20 : vector<1x16xf32>
    %22 = arith.negf %21 : vector<1x16xf32>
    %23 = math.exp %22 : vector<1x16xf32>
    %cst_17 = arith.constant 1.000000e+00 : f32
    %24 = vector.broadcast %cst_17 : f32 to vector<1x16xf32>
    %25 = arith.addf %24, %23 : vector<1x16xf32>
    %26 = arith.divf %24, %25 : vector<1x16xf32>
    %c0_18 = arith.constant 0 : index
    %c0_19 = arith.constant 0 : index
    %27 = vector.load %arg8[%c0_18, %c0_19] : memref<1x16xf32, #tpu.memory_space<vmem>>, vector<1x16xf32>
    tpu.vector_store %arg8[%c0_18, %c0_19], %26 {strides = array<i32>} : memref<1x16xf32, #tpu.memory_space<vmem>>, vector<1x16xf32>,
    return
  }
  func.func @transform_0(%arg0: i32) -> (i32, i32) {
    %c0_i32 = arith.constant 0 : i32
    %c0_i32_0 = arith.constant 0 : i32
    return %arg0, %c0_i32 : i32, i32
  }
  func.func @transform_1(%arg0: i32) -> (i32, i32) {
    %c0_i32 = arith.constant 0 : i32
    %c0_i32_0 = arith.constant 0 : i32
    %c0_i32_1 = arith.constant 0 : i32
    return %c0_i32, %c0_i32_0 : i32, i32
  }
  func.func @transform_2(%arg0: i32) -> (i32, i32) {
    %c0_i32 = arith.constant 0 : i32
    %c0_i32_0 = arith.constant 0 : i32
    %c0_i32_1 = arith.constant 0 : i32
    return %c0_i32, %c0_i32_0 : i32, i32
  }
  func.func @transform_3(%arg0: i32) -> (i32, i32) {
    %c0_i32 = arith.constant 0 : i32
    %c0_i32_0 = arith.constant 0 : i32
    %c0_i32_1 = arith.constant 0 : i32
    return %c0_i32, %c0_i32_0 : i32, i32
  }
  func.func @transform_4(%arg0: i32) -> (i32, i32) {
    %c0_i32 = arith.constant 0 : i32
    %c0_i32_0 = arith.constant 0 : i32
    %c0_i32_1 = arith.constant 0 : i32
    return %c0_i32, %c0_i32_0 : i32, i32
  }
  func.func @transform_5(%arg0: i32) -> (i32, i32) {
    %c0_i32 = arith.constant 0 : i32
    %c0_i32_0 = arith.constant 0 : i32
    %c0_i32_1 = arith.constant 0 : i32
    return %c0_i32, %c0_i32_0 : i32, i32
  }
  func.func @transform_6(%arg0: i32) -> (i32, i32) {
    %c0_i32 = arith.constant 0 : i32
    %c0_i32_0 = arith.constant 0 : i32
    %c0_i32_1 = arith.constant 0 : i32
    return %c0_i32, %c0_i32_0 : i32, i32
  }
  func.func @transform_7(%arg0: i32) -> (i32, i32) {
    %c0_i32 = arith.constant 0 : i32
    %c0_i32_0 = arith.constant 0 : i32
    return %c0_i32, %arg0 : i32, i32
  }
}

</mosaic_0001>

<bundles_post_ra>
// kernel: tpu_custom_call.1
= control target key start
LH: loop header
LB: loop body
LE: loop exit
PB: predicated region body
PF: predicated region fallthrough
CT: control target
= control target key end

     0   :  { %13 = vsyncpa [#allocation4], 0  ;;  %s724_s0 = inlined_call_operand.hbm [shape: f32[16,64], index: 0, kind: input, shape index: {}]   ;;  %s725_s1 = inlined_call_operand.hbm [shape: bf16[64,256], index: 1, kind: input, shape index: {}]   ;;  %s726_s2 = inlined_call_operand.vmem [shape: f32[1,256], index: 2, kind: input, shape index: {}]   ;;  %s727_s3 = inlined_call_operand.hbm [shape: bf16[256,128], index: 3, kind: input, shape index: {}]   ;;  %s728_s4 = inlined_call_operand.vmem [shape: f32[1,128], index: 4, kind: input, shape index: {}]   ;;  %s729_s5 = inlined_call_operand.vmem [shape: f32[1,128], index: 5, kind: input, shape index: {}]   ;;  %s730_s6 = inlined_call_operand.<no memory space> [shape: f32[1,1], index: 6, kind: input, shape index: {}]   ;;  %s731_s7 = inlined_call_operand.hbm [shape: f32[1,16], index: 7, kind: output, shape index: {}]  }
   0x1   :  { %14 = vsyncpa [#allocation7], 0 }
   0x2   :  { %15 = vsyncpa [#allocation5], 0  ;;  %s649_s24 = smov [#allocation6]   ;;  %s650_s26 = smov [#allocation3]  }
   0x3   :  { %s33_s25 = sshll.u32 %s649_s24, 4  ;;  %s21_s27 = sshll.u32 %s650_s26, 4  ;;  %s34_s25 = int_to_ptr.vmem [resolvable:$true] %s33_s25  ;;  %s22_s27 = int_to_ptr.vmem [resolvable:$true] %s21_s27 }
   0x4   :  { %s571_s28 = scalar_lea.vmem %s34_s25, 1024  ;;  %p576_p1 = scmp.lt.s32.totalorder %s34_s25, %s34_s25 }
   0x5   :  { %p572_p0 = scmp.ne.s32.totalorder %s34_s25, %s571_s28  ;;  %p577_p2 = scmp.lt.s32.totalorder %s571_s28, %s571_s28 }
   0x7   :  { %p578_p3 = por %p577_p2, %p576_p1 }
   0x9   :  { %p579_p4 = pnand %p578_p3, %p572_p0 }
   0xb   :  { %582 = shalt.err (!%p579_p4)
}
   0xc   :  { %s651_s29 = smov 128   ;;  %s652_s30 = smov 8  }
   0xd   :  { %39 = dma.hbm_to_vmem [thread:$0]  %s725_s1, 1024, %s34_s25, [#allocation7], %s651_s29, %s651_s29, %s652_s30  }
   0xe   :  { %s591_s10 = scalar_lea.vmem %s22_s27, 256  ;;  %p596_p6 = scmp.lt.s32.totalorder %s22_s27, %s22_s27 }
   0xf   :  { %p592_p5 = scmp.ne.s32.totalorder %s22_s27, %s591_s10  ;;  %p597_p7 = scmp.lt.s32.totalorder %s591_s10, %s591_s10 }
  0x11   :  { %p598_p8 = por %p597_p7, %p596_p6 }
  0x13   :  { %p599_p9 = pnand %p598_p8, %p592_p5 }
  0x15   :  { %602 = shalt.err (!%p599_p9)
}
  0x16   :  { %27 = dma.hbm_to_vmem [thread:$0]  %s724_s0, 256, %s22_s27, [#allocation4], %s651_s29, %s651_s29, %s652_s30  }
  0x17   :  { %s653_s13 = smov [#allocation8]  }
  0x18   :  { %s47_s14 = sshll.u32 %s653_s13, 4  ;;  %s48_s14 = int_to_ptr.vmem [resolvable:$true] %s47_s14 }
  0x19   :  { %s611_s15 = scalar_lea.vmem %s48_s14, 2048  ;;  %p616_p11 = scmp.lt.s32.totalorder %s48_s14, %s48_s14 }
  0x1a   :  { %p612_p10 = scmp.ne.s32.totalorder %s48_s14, %s611_s15  ;;  %p617_p12 = scmp.lt.s32.totalorder %s611_s15, %s611_s15 }
  0x1c   :  { %p618_p13 = por %p617_p12, %p616_p11 }
  0x1e   :  { %p619_p0 = pnand %p618_p13, %p612_p10 }
  0x20   :  { %622 = shalt.err (!%p619_p0)
}
  0x21   :  { %s654_s1 = smov 64   ;;  %s655_s16 = smov 4  }
  0x22   :  { %53 = dma.hbm_to_vmem [thread:$0]  %s727_s3, 2048, %s48_s14, [#allocation7], %s654_s1, %s654_s1, %s655_s16  }
  0x23   :  { %643 = dma.done.wait [#allocation4], 256  }
  0x24   :  { %644 = vsyncadd [#allocation4], 4294967040 }
  0x25   :  { %645 = dma.done.wait [#allocation7], 3072  }
  0x26   :  { %646 = vsyncadd [#allocation7], 4294964224  ;;  %v656_v0 = vmov 0   ;;  %v531_v1 = vld [vmem:[#allocation6 + $0x34] ss:$8 sps:$4 sm:$0xff]   ;;  %v547_v14 = vld [vmem:[#allocation8 + $0x68] sm:$0xff]   ;;  %v83_v28 = vlaneseq  ;;  %v366_v62 = vstv %s730_s6 }
  0x27   :  { %169 = vmatprep.mubr.bf16.mxu0 %v656_v0  ;;  %v533_v2 = vld [vmem:[#allocation6 + $0x30] ss:$8 sps:$4 sm:$0xff]   ;;  %145 = vmatprep.subr.bf16.mxu0 %v531_v1  ;;  %v534_v3 = vld [vmem:[#allocation6 + $0x24] ss:$8 sps:$4 sm:$0xff]   ;;  %v536_v4 = vld [vmem:[#allocation6 + $0x20] ss:$8 sps:$4 sm:$0xff]  }
  0x28   :  { %146 = vmatpush1.bf16.msra.mxu0 %v533_v2  ;;  %v537_v5 = vld [vmem:[#allocation6 + $0x14] ss:$8 sps:$4 sm:$0xff]   ;;  %v539_v6 = vld [vmem:[#allocation6 + $0x10] ss:$8 sps:$4 sm:$0xff]   ;;  %v540_v7 = vld [vmem:[#allocation6 + $0x4] ss:$8 sps:$4 sm:$0xff]  }
  0x29   :  { %147 = vmatprep.subr.bf16.mxu0 %v534_v3  ;;  %v543_v8 = vld [vmem:[#allocation8 + $0x78] sm:$0xff]   ;;  %v545_v10 = vld [vmem:[#allocation8 + $0x70] sm:$0xff]   ;;  %v542_v11 = vld [vmem:[#allocation6] ss:$8 sps:$4 sm:$0xff]   ;;  %vm133_vm0 = vcmask 523264   ;;  %v84_v29 = vshrl.u32 %v83_v28, 7 }
  0x2a   :  { %v544_v9 = vld [vmem:[#allocation8 + $0x38] sm:$0xff]   ;;  %488 = vmatprep.subr.bf16.mxu1 %v543_v8  ;;  %v70_v12 = vld [vmem:[#allocation3] sm:$0xff]  ;;  %v548_v16 = vld [vmem:[#allocation8 + $0x28] sm:$0xff]   ;;  %v657_v49 = vmov 0.0   ;;  %vm658_vm1 = vmmov 0   ;;  %vm443_vm2 = vcmask 122880  }
  0x2b   :  { %489 = vmatpush3.bf16.msra.mxu1 %v544_v9  ;;  %v546_v13 = vld [vmem:[#allocation8 + $0x30] sm:$0xff]   ;;  %v71_v15 = vld [vmem:[#allocation3 + $0x8] sm:$0xff]  ;;  %v549_v18 = vld [vmem:[#allocation8 + $0x60] sm:$0xff]   ;;  %v89_v30 = vsub.s32 1, %v84_v29  ;;  %v85_v31 = vsub.s32 0, %v84_v29 }
  0x2c   :  { %148 = vmatpush1.bf16.msra.mxu0 %v536_v4  ;;  %490 = vmatprep.subr.bf16.mxu1 %v545_v10  ;;  %v72_v17 = vpack.c.bf16 %v71_v15, %v70_v12  ;;  %v550_v19 = vld [vmem:[#allocation8 + $0x20] sm:$0xff]   ;;  %v551_v20 = vld [vmem:[#allocation8 + $0x58] sm:$0xff]   ;;  %v553_v22 = vld [vmem:[#allocation8 + $0x50] sm:$0xff]  }
  0x2d   :  { %149 = vmatprep.subr.bf16.mxu0 %v537_v5  ;;  %v552_v21 = vld [vmem:[#allocation8 + $0x18] sm:$0xff]   ;;  %v554_v23 = vld [vmem:[#allocation8 + $0x10] sm:$0xff]   ;;  %v555_v24 = vld [vmem:[#allocation8 + $0x48] sm:$0xff]  }
  0x2e   :  { %v556_v25 = vld [vmem:[#allocation8 + $0x8] sm:$0xff]   ;;  %v557_v26 = vld [vmem:[#allocation8 + $0x40] sm:$0xff]   ;;  %v81_v32 = vld [vmem:[%s726_s2] sm:$0x3] }
  0x2f   :  { %491 = vmatpush3.bf16.msra.mxu1 %v546_v13  ;;  %v558_v27 = vld [vmem:[#allocation8] sm:$0xff]   ;;  %v90_v34 = vrot.slane %v81_v32, %v89_v30  ;;  %v86_v35 = vrot.slane %v81_v32, %v85_v31  ;;  %v470_v56 = vld [vmem:[%s728_s4] ss:$0 sm:$0xff]  ;;  %s659_s4 = smov [#allocation9]  }
  0x30   :  { %150 = vmatpush1.bf16.msra.mxu0 %v539_v6  ;;  %492 = vmatprep.subr.bf16.mxu1 %v547_v14  ;;  %v364_v61 = vld [vmem:[%s729_s5] sm:$0x1]  ;;  %s451_s24 = sshll.u32 %s659_s4, 4  ;;  %s452_s24 = int_to_ptr.vmem [resolvable:$true] %s451_s24 }
  0x31   :  { %151 = vmatprep.subr.bf16.mxu0 %v540_v7  ;;  %s623_s5 = scalar_lea.vmem %s452_s24, 16  ;;  %s627_s25 = scalar_lea.vmem %s452_s24, 32 }
  0x32   :  { %p624_p1 = scmp.ne.s32.totalorder %s452_s24, %s623_s5  ;;  %p628_p2 = scmp.lt.s32.totalorder %s452_s24, %s452_s24 }
  0x33   :  { %493 = vmatpush3.bf16.msra.mxu1 %v548_v16  ;;  %p629_p3 = scmp.lt.s32.totalorder %s627_s25, %s623_s5 }
  0x34   :  { %152 = vmatpush1.bf16.msra.mxu0 %v542_v11  ;;  %494 = vmatprep.subr.bf16.mxu1 %v549_v18 }
  0x35   :  { %513 = vmatprep.subr.mxu0 %v657_v49  ;;  %p630_p4 = por %p629_p3, %p628_p2 }
  0x37   :  { %469 = vmatmul.mubr.msk.bf16.vlgmr.msra.gmra.mxu0 %vm133_vm0, %v72_v17  ;;  %495 = vmatpush3.bf16.msra.mxu1 %v550_v19  ;;  %p631_p5 = pnand %p630_p4, %p624_p1 }
  0x38   :  { %496 = vmatprep.subr.bf16.mxu1 %v551_v20  ;;  %517 = vmatprep.mubr.msk.f32.mxu0 %vm658_vm1, %v657_v49 }
  0x3b   :  { %497 = vmatpush3.bf16.msra.mxu1 %v552_v21 }
  0x3c   :  { %498 = vmatprep.subr.bf16.mxu1 %v553_v22 }
  0x3f   :  { %499 = vmatpush3.bf16.msra.mxu1 %v554_v23 }
  0x40   :  { %500 = vmatprep.subr.bf16.mxu1 %v555_v24 }
  0x43   :  { %501 = vmatpush3.bf16.msra.mxu1 %v556_v25 }
  0x44   :  { %502 = vmatprep.subr.bf16.mxu1 %v557_v26 }
  0x47   :  { %503 = vmatpush3.bf16.msra.mxu1 %v558_v27 }
  0xf7   :  { %v171_v33 = vpop.f32.mrf.mxu0 }
  0xf8   :  { %v172_v40 = vadd.f32 %v171_v33, %v86_v35 }
  0xf9   :  { %v173_v36 = vpop.f32.mrf.mxu0 }
  0xfa   :  { %v174_v38 = vadd.f32 %v173_v36, %v90_v34  ;;  %v180_v46 = vmax.f32 %v172_v40, 0.0 }
  0xfb   :  { %v175_v37 = vpop.f32.mrf.mxu0 }
  0xfc   :  { %v176_v39 = vadd.f32 %v175_v37, %v86_v35  ;;  %v181_v44 = vmax.f32 %v174_v38, 0.0 }
  0xfd   :  { %v177_v41 = vpop.f32.mrf.mxu0 }
  0xfe   :  { %v178_v42 = vadd.f32 %v177_v41, %v90_v34  ;;  %v182_v43 = vmax.f32 %v176_v39, 0.0 }
 0x100   :  { %v183_v45 = vmax.f32 %v178_v42, 0.0  ;;  %v184_v48 = vpack.c.bf16 %v182_v43, %v180_v46 }
 0x102   :  { %v185_v47 = vpack.c.bf16 %v183_v45, %v181_v44 }
 0x104   :  { %353 = vmatprep.mubr.bf16.mxu1 %v185_v47 }
 0x105   :  { %354 = vmatmul.mubr.bf16.vlgmr.msra.gmra.mxu1 %v184_v48 }
 0x1c5   :  { %v504_v50 = vpop.f32.mrf.mxu1 }
 0x1c7   :  { %v505_v51 = vpop.f32.mrf.mxu1 }
 0x1c8   :  { %v506_v54 = vadd.f32 %v505_v51, %v504_v50 }
 0x1c9   :  { %v507_v52 = vpop.f32.mrf.mxu1 }
 0x1ca   :  { %v356_v58 = vadd.f32 %v506_v54, %v470_v56 }
 0x1cb   :  { %v508_v53 = vpop.f32.mrf.mxu1 }
 0x1cc   :  { %v509_v55 = vadd.f32 %v508_v53, %v507_v52  ;;  %v362_v60 = vmax.f32 %v356_v58, 0.0 }
 0x1ce   :  { %v359_v57 = vadd.f32 %v509_v55, %v470_v56 }
 0x1d0   :  { %v363_v59 = vmax.f32 %v359_v57, 0.0 }
 0x1d2   :  { %514 = vmatpush3.xpose.msra.mxu0 %v363_v59 }
 0x1d3   :  { %515 = vmatprep.subr.mxu0 %v657_v49 }
 0x1d6   :  { %516 = vmatpush3.xpose.msra.mxu0 %v362_v60 }
 0x1d9   :  { %518 = vmatmul.mubr.f32.vlgmr.msra.gmra.mxu0 %v364_v61 }
 0x299   :  { %v433_v63 = vpop.f32.mrf.mxu0 }
 0x29a   :  { %v434_v0 = vadd.f32 %v433_v63, %v366_v62 }
 0x29b   :  { %v519_v1 = vpop.f32.mrf.mxu0 }
 0x29c   :  { %v487_v2 = vmul.f32 -1.442695, %v434_v0 }
 0x29e   :  { %559 = vpow2.f32 %v487_v2 }
 0x2ab   :  { %v560_v3 = vpop.eup %559 }
 0x2ac   :  { %v440_v4 = vadd.f32 1.0, %v560_v3 }
 0x2ae   :  { %561 = vrcp.f32 %v440_v4 }
 0x2bb   :  { %v562_v5 = vpop.eup %561 }
 0x2bc   :  { %444 = vst.msk [vmem:[#allocation9] sm:$0x1] %vm443_vm2, %v562_v5 }
 0x2bd   :  { %634 = shalt.err (!%p631_p5)
}
 0x2be   :  { %454 = dma.vmem_to_hbm [thread:$0]  %s452_s24, 16, %s731_s7, [#allocation5]  }
 0x2bf   :  { %647 = dma.done.wait [#allocation5], 16  }
 0x2c0   :  { %648 = vsyncadd [#allocation5], 4294967280 }
 0x2c1   :  { %458 = vsyncpa [#allocation4], 1 }
 0x2c2   :  { %459 = vsyncpa [#allocation7], 1 }
 0x2c3   :  { %460 = vsyncpa [#allocation5], 1 }

</bundles_post_ra>
